<compile_context>
chip_gen: v7x
topology: tpu7x:2x2x1
jax: 0.10.0
libtpu: 0.0.40
codegen_flags: <defaults>
</compile_context>

<pallas_src>
import functools
import numpy as np
import jax
import jax.numpy as jnp
from jax.experimental import pallas as pl
from jax.experimental.pallas import tpu as pltpu

# Small hyperparameters consistent with the module structure
FREQ_RES = 32            # freq_res  (F)
SAMPLE_RES = 8           # sample_res (kernel length K)
N_SOURCES = 2            # n_sources (G)  -- module's forward assumes 2 sources
STRIDE = SAMPLE_RES // 2 # S = K // 2 (conv stride and padding)
MAX_TILE_ROWS = 1024     # cap rows per grid step (v7x VMEM headroom)


def _round_up(x, m):
    return (x + m - 1) // m * m


# ---------------------------------------------------------------------------
# Fused Pallas kernel (one grid step per row tile of whole batch slabs)
# ---------------------------------------------------------------------------
def _fused_kernel(sig_ref, valid_ref, w3_ref, b3_ref, wdec_ref, bdec_ref,
                  out_ref, *, F, S):
    """sig_ref:   [RT, 3S]  bf16  per row: S padded-signal samples of mix|s1|s2
       valid_ref: [RT, 1]   f32   1.0 for real time rows, 0.0 for pad rows
       w3_ref:    [6S, 4F]  bf16  fused enc/mod weights, rows = cur taps|next taps
       b3_ref:    [1, 4F]   f32   [bmix bmix bmod bmod]
       wdec_ref:  [4F, 2S]  bf16  fused overlap-add decoder weights [W_b ; W_a]
       bdec_ref:  [1, 2S]   f32   decoder bias repeated per sample
       out_ref:   [RT, 2F+2S] f32 lanes: [mask1 | mask2 | recon chunks]"""
    # ---- in-register unfold: frame[t] = [sig row t | sig row t+1]
    cur = sig_ref[...].astype(jnp.float32)                          # [RT, 3S]
    nxt = jnp.concatenate(
        [cur[1:], jnp.zeros((1, 3 * S), jnp.float32)], axis=0)      # row t+1
    frames = jnp.concatenate([cur, nxt], axis=1)                    # [RT, 6S]

    # ---- one MXU matmul: mixture encoding (duplicated) + both modulator masks
    acts = jnp.dot(frames.astype(jnp.bfloat16), w3_ref[...],
                   preferred_element_type=jnp.float32) + b3_ref[...]
    acts = jnp.maximum(acts, 0.0)                                   # [RT, 4F]

    valid = valid_ref[...]                                          # [RT, 1]
    enc = acts[:, :2 * F]                                           # [enc|enc]
    masks = acts[:, 2 * F:] * valid                                 # [m1 |m2 ], pad rows zeroed
    srec = masks * enc                                              # masked encodings

    # ---- fused grouped ConvTranspose1d + overlap-add as ONE 128-deep matmul:
    # chunk[t] = srec[t] @ W_b + srec[t+1] @ W_a + bias
    srec_next = jnp.concatenate(
        [srec[1:], jnp.zeros((1, 2 * F), jnp.float32)], axis=0)
    lhs = jnp.concatenate([srec, srec_next], axis=1)                # [RT, 4F]
    chunks = (jnp.dot(lhs.astype(jnp.bfloat16), wdec_ref[...],
                      preferred_element_type=jnp.float32)
              + bdec_ref[...]) * valid                              # [RT, 2S]

    # ---- single in-register-assembled store of the lane-dense payload
    out_ref[...] = jnp.concatenate([masks, chunks], axis=1)


# ---------------------------------------------------------------------------
# Parameters + wrapper
# ---------------------------------------------------------------------------
def init_params(key):
    F, K, G = FREQ_RES, SAMPLE_RES, N_SOURCES
    ks = jax.random.split(key, 6)
    sc = 1.0 / np.sqrt(K)
    return {
        'Wmix': jax.random.normal(ks[0], (F, 1, K), jnp.float32) * sc,
        'bmix': jax.random.normal(ks[1], (F,), jnp.float32) * sc,
        'Wmod': jax.random.normal(ks[2], (F, 1, K), jnp.float32) * sc,
        'bmod': jax.random.normal(ks[3], (F,), jnp.float32) * sc,
        'Wdec': jax.random.normal(ks[4], (G * F, 1, K), jnp.float32)
                * (1.0 / np.sqrt(F * K)),
        'bdec': jax.random.normal(ks[5], (G,), jnp.float32) * 0.1,
    }


@jax.jit
def forward(mixture, clean_sources, params):
    """mixture: [B, 1, N], clean_sources: [B, 2, N] (float32).
    Returns (recon_sources [B, 2, T*S - 1], enc_masks [B, 2, F, T])."""
    F, K, S, G = FREQ_RES, SAMPLE_RES, STRIDE, N_SOURCES
    B, _, N = mixture.shape
    T = N // S + 1
    L_out = T * S - 1
    # >= 1 zero pad row per slab (overlap-add needs srec[T] == 0); x16 for bf16.
    T_pad = _round_up(T + 1, 16)
    R = B * T_pad

    # ---- row-tile selection: whole batch slabs per step, capped for VMEM,
    #      and >= 2 grid steps whenever B allows (megacore load balance).
    max_slabs = max(1, MAX_TILE_ROWS // T_pad)
    spt = min(B, max_slabs, max(1, B // 2))
    while B % spt:
        spt -= 1
    R_TILE = spt * T_pad

    # ---- contiguous S-sample signal rows (no gather): row t = padded[t*S:(t+1)*S]
    sigs = jnp.concatenate([mixture, clean_sources], axis=1)        # [B, 3, N]
    rp = T * S - N                                                  # right pad
    sp = jnp.pad(sigs, ((0, 0), (0, 0), (S, rp)))                   # [B,3,(T+1)S]
    rows = sp.reshape(B, 3, T + 1, S)
    rows = jnp.pad(rows, ((0, 0), (0, 0), (0, T_pad - (T + 1)), (0, 0)))
    sig_rows = (jnp.transpose(rows, (0, 2, 1, 3))
                .reshape(R, 3 * S).astype(jnp.bfloat16))            # [R, 3S]

    valid = jnp.tile((jnp.arange(T_pad) < T).astype(jnp.float32),
                     B).reshape(R, 1)                               # [R, 1]

    # ---- fused encoder/modulator weights [6S, 4F]; rows ordered to match the
    # in-kernel frame layout: [mix|s1|s2 taps 0..S-1, mix|s1|s2 taps S..K-1]
    WmixT = params['Wmix'][:, 0, :].T                               # [K, F]
    WmodT = params['Wmod'][:, 0, :].T                               # [K, F]
    Zsf = jnp.zeros((S, F), jnp.float32)

    def rowblk(c0, c1, c2, c3):
        return jnp.concatenate([c0, c1, c2, c3], axis=1)

    W3 = jnp.concatenate([
        rowblk(WmixT[:S], WmixT[:S], Zsf, Zsf),      # mix, current row taps
        rowblk(Zsf, Zsf, WmodT[:S], Zsf),            # src1, current row taps
        rowblk(Zsf, Zsf, Zsf, WmodT[:S]),            # src2, current row taps
        rowblk(WmixT[S:], WmixT[S:], Zsf, Zsf),      # mix, next row taps
        rowblk(Zsf, Zsf, WmodT[S:], Zsf),            # src1, next row taps
        rowblk(Zsf, Zsf, Zsf, WmodT[S:]),            # src2, next row taps
    ], axis=0).astype(jnp.bfloat16)                  # [6S, 4F]
    b3 = jnp.concatenate([params['bmix'], params['bmix'],
                          params['bmod'], params['bmod']])[None, :]  # [1, 4F]

    # ---- fused overlap-add decoder weights [4F, 2S] = [W_b ; W_a], block-diag
    Wd = params['Wdec'].reshape(G, F, K)             # [2, F, K]
    Zfs = jnp.zeros((F, S), jnp.float32)
    W_b = jnp.concatenate(
        [jnp.concatenate([Wd[0, :, S:], Zfs], axis=1),
         jnp.concatenate([Zfs, Wd[1, :, S:]], axis=1)], axis=0)     # [2F, 2S]
    W_a = jnp.concatenate(
        [jnp.concatenate([Wd[0, :, :S], Zfs], axis=1),
         jnp.concatenate([Zfs, Wd[1, :, :S]], axis=1)], axis=0)     # [2F, 2S]
    Wdec2 = jnp.concatenate([W_b, W_a], axis=0).astype(jnp.bfloat16)  # [4F, 2S]
    bdec_row = jnp.repeat(params['bdec'], S)[None, :]               # [1, 2S]

    OUT_LANES = 2 * F + 2 * S                                       # 72 used lanes
    out = pl.pallas_call(
        functools.partial(_fused_kernel, F=F, S=S),
        out_shape=jax.ShapeDtypeStruct((R, OUT_LANES), jnp.float32),
        grid=(R // R_TILE,),
        in_specs=[
            pl.BlockSpec((R_TILE, 3 * S), lambda r: (r, 0)),
            pl.BlockSpec((R_TILE, 1), lambda r: (r, 0)),
            pl.BlockSpec((6 * S, 4 * F), lambda r: (0, 0)),
            pl.BlockSpec((1, 4 * F), lambda r: (0, 0)),
            pl.BlockSpec((4 * F, 2 * S), lambda r: (0, 0)),
            pl.BlockSpec((1, 2 * S), lambda r: (0, 0)),
        ],
        out_specs=pl.BlockSpec((R_TILE, OUT_LANES), lambda r: (r, 0)),
        compiler_params=pltpu.CompilerParams(
            dimension_semantics=("parallel",),
            vmem_limit_bytes=32 * 1024 * 1024),
    )(sig_rows, valid, W3, b3, Wdec2, bdec_row)

    # ---- unpack the lane-dense payload back into PyTorch layouts
    slab = out.reshape(B, T_pad, OUT_LANES)
    masks_tf = slab[:, :T, :2 * F]                                  # [B, T, 2F]
    enc_masks = masks_tf.reshape(B, T, G, F).transpose(0, 2, 3, 1)  # [B,G,F,T]

    chunks = slab[:, :T, 2 * F:]                                    # [B, T, 2S]
    recon_sources = (chunks.reshape(B, T, G, S).transpose(0, 2, 1, 3)
                     .reshape(B, G, T * S)[:, :, :L_out])
    return recon_sources, enc_masks


# ---------------------------------------------------------------------------
# Pure-numpy reference (direct Conv1d / ConvTranspose1d semantics)
# ---------------------------------------------------------------------------
def reference_forward(mixture, clean_sources, p):
    F, K, S, G = FREQ_RES, SAMPLE_RES, STRIDE, N_SOURCES
    B, _, N = mixture.shape
    T = N // S + 1

    def conv_relu(sig, W, b):
        xp = np.pad(sig, ((0, 0), (S, S)))
        out = np.zeros((B, F, T), np.float32)
        for t in range(T):
            seg = xp[:, t * S:t * S + K]
            out[:, :, t] = seg @ W.T + b
        return np.maximum(out, 0.0)

    Wmix = p['Wmix'][:, 0, :]
    Wmod = p['Wmod'][:, 0, :]
    enc_mix = conv_relu(mixture[:, 0], Wmix, p['bmix'])
    m1 = conv_relu(clean_sources[:, 0], Wmod, p['bmod'])
    m2 = conv_relu(clean_sources[:, 1], Wmod, p['bmod'])
    masks = np.stack([m1, m2], axis=1)                 # [B, G, F, T]
    srec = masks * enc_mix[:, None]                    # [B, G, F, T]

    Wd = p['Wdec'].reshape(G, F, K)
    full = np.zeros((B, G, (T + 1) * S), np.float32)
    for t in range(T):
        frame = np.einsum('bgf,gfk->bgk', srec[:, :, :, t], Wd)
        full[:, :, t * S:t * S + K] += frame
    L_out = T * S - 1
    recon = full[:, :, S:S + L_out] + p['bdec'][None, :, None]
    return recon, masks


# ---------------------------------------------------------------------------
if __name__ == "__main__":
    key = jax.random.PRNGKey(0)
    pkey, mkey, skey = jax.random.split(key, 3)
    params = init_params(pkey)

    B, N = 4, 64
    mixture = jax.random.normal(mkey, (B, 1, N), jnp.float32)
    clean_sources = jax.random.normal(skey, (B, N_SOURCES, N), jnp.float32)

    recon, enc_masks = forward(mixture, clean_sources, params)
    jax.block_until_ready((recon, enc_masks))

    ref_recon, ref_masks = reference_forward(
        np.asarray(mixture), np.asarray(clean_sources),
        {k: np.asarray(v) for k, v in params.items()})

    # bf16 MXU multiplicands (same effective precision as default MXU mode),
    # f32 accumulation -> compare at ~bf16-level tolerance.
    np.testing.assert_allclose(np.asarray(enc_masks), ref_masks,
                               rtol=2e-2, atol=2e-2)
    np.testing.assert_allclose(np.asarray(recon), ref_recon,
                               rtol=2e-2, atol=2e-2)
    print("KERNEL_OK")
</pallas_src>

<mosaic_0001>
module attributes {stable_mosaic.version = 11 : i64} {
  func.func @_fused_kernel(%arg0: i32, %arg1: memref<64x12xbf16, #tpu.memory_space<vmem>>, %arg2: memref<64x1xf32, #tpu.memory_space<vmem>>, %arg3: memref<24x128xbf16, #tpu.memory_space<vmem>>, %arg4: memref<1x128xf32, #tpu.memory_space<vmem>>, %arg5: memref<128x8xbf16, #tpu.memory_space<vmem>>, %arg6: memref<1x8xf32, #tpu.memory_space<vmem>>, %arg7: memref<64x72xf32, #tpu.memory_space<vmem>>) attributes {dimension_semantics = [#tpu.dimension_semantics<parallel>], iteration_bounds = array<i64: 2>, scalar_prefetch = 0 : i64, scratch_operands = 0 : i64, tpu.core_type = #tpu.core_type<tc>, window_params = [{transform_indices = @transform_0, window_bounds = array<i64: 64, 12>}, {transform_indices = @transform_1, window_bounds = array<i64: 64, 1>}, {pipeline_mode = #tpu.pipeline_mode<synchronous>, transform_indices = @transform_2, window_bounds = array<i64: 24, 128>}, {pipeline_mode = #tpu.pipeline_mode<synchronous>, transform_indices = @transform_3, window_bounds = array<i64: 1, 128>}, {pipeline_mode = #tpu.pipeline_mode<synchronous>, transform_indices = @transform_4, window_bounds = array<i64: 128, 8>}, {pipeline_mode = #tpu.pipeline_mode<synchronous>, transform_indices = @transform_5, window_bounds = array<i64: 1, 8>}, {transform_indices = @transform_6, window_bounds = array<i64: 64, 72>}]} {
    %c0 = arith.constant 0 : index
    %c0_0 = arith.constant 0 : index
    %0 = vector.load %arg1[%c0, %c0_0] : memref<64x12xbf16, #tpu.memory_space<vmem>>, vector<64x12xbf16>
    %1 = arith.extf %0 : vector<64x12xbf16> to vector<64x12xf32>
    %2 = vector.extract_strided_slice %1 {offsets = [1, 0], sizes = [63, 12], strides = [1, 1]} : vector<64x12xf32> to vector<63x12xf32>
    %cst = arith.constant 0.000000e+00 : f32
    %3 = vector.broadcast %cst : f32 to vector<1x12xf32>
    %4 = tpu.concatenate %2, %3 in 0 : vector<63x12xf32>, vector<1x12xf32> -> vector<64x12xf32>
    %5 = tpu.concatenate %1, %4 in 1 : vector<64x12xf32>, vector<64x12xf32> -> vector<64x24xf32>
    %6 = arith.truncf %5 : vector<64x24xf32> to vector<64x24xbf16>
    %c0_1 = arith.constant 0 : index
    %c0_2 = arith.constant 0 : index
    %7 = vector.load %arg3[%c0_1, %c0_2] : memref<24x128xbf16, #tpu.memory_space<vmem>>, vector<24x128xbf16>
    %cst_3 = arith.constant dense<0.000000e+00> : vector<64x128xf32>
    %8 = tpu.matmul %6, %7, %cst_3 {dimension_numbers = #tpu.dot_dimension_numbers<[1], [0], [0], [1], [0, 0, 1, 1], [], []>} : vector<64x24xbf16>, vector<24x128xbf16>, vector<64x128xf32> -> vector<64x128xf32>
    %c0_4 = arith.constant 0 : index
    %c0_5 = arith.constant 0 : index
    %9 = vector.load %arg4[%c0_4, %c0_5] : memref<1x128xf32, #tpu.memory_space<vmem>>, vector<1x128xf32>
    %10 = vector.broadcast %9 : vector<1x128xf32> to vector<64x128xf32>
    %11 = arith.addf %8, %10 : vector<64x128xf32>
    %cst_6 = arith.constant 0.000000e+00 : f32
    %12 = vector.broadcast %cst_6 : f32 to vector<64x128xf32>
    %13 = arith.maximumf %11, %12 : vector<64x128xf32>
    %c0_7 = arith.constant 0 : index
    %c0_8 = arith.constant 0 : index
    %14 = vector.load %arg2[%c0_7, %c0_8] : memref<64x1xf32, #tpu.memory_space<vmem>>, vector<64x1xf32>
    %15 = vector.extract_strided_slice %13 {offsets = [0, 0], sizes = [64, 64], strides = [1, 1]} : vector<64x128xf32> to vector<64x64xf32>
    %16 = vector.extract_strided_slice %13 {offsets = [0, 64], sizes = [64, 64], strides = [1, 1]} : vector<64x128xf32> to vector<64x64xf32>
    %17 = vector.broadcast %14 : vector<64x1xf32> to vector<64x64xf32>
    %18 = arith.mulf %16, %17 : vector<64x64xf32>
    %19 = arith.mulf %18, %15 : vector<64x64xf32>
    %20 = vector.extract_strided_slice %19 {offsets = [1, 0], sizes = [63, 64], strides = [1, 1]} : vector<64x64xf32> to vector<63x64xf32>
    %cst_9 = arith.constant 0.000000e+00 : f32
    %21 = vector.broadcast %cst_9 : f32 to vector<1x64xf32>
    %22 = tpu.concatenate %20, %21 in 0 : vector<63x64xf32>, vector<1x64xf32> -> vector<64x64xf32>
    %23 = tpu.concatenate %19, %22 in 1 : vector<64x64xf32>, vector<64x64xf32> -> vector<64x128xf32>
    %24 = arith.truncf %23 : vector<64x128xf32> to vector<64x128xbf16>
    %c0_10 = arith.constant 0 : index
    %c0_11 = arith.constant 0 : index
    %25 = vector.load %arg5[%c0_10, %c0_11] : memref<128x8xbf16, #tpu.memory_space<vmem>>, vector<128x8xbf16>
    %cst_12 = arith.constant dense<0.000000e+00> : vector<64x8xf32>
    %26 = tpu.matmul %24, %25, %cst_12 {dimension_numbers = #tpu.dot_dimension_numbers<[1], [0], [0], [1], [0, 0, 1, 1], [], []>} : vector<64x128xbf16>, vector<128x8xbf16>, vector<64x8xf32> -> vector<64x8xf32>
    %c0_13 = arith.constant 0 : index
    %c0_14 = arith.constant 0 : index
    %27 = vector.load %arg6[%c0_13, %c0_14] : memref<1x8xf32, #tpu.memory_space<vmem>>, vector<1x8xf32>
    %28 = vector.broadcast %27 : vector<1x8xf32> to vector<64x8xf32>
    %29 = arith.addf %26, %28 : vector<64x8xf32>
    %30 = vector.broadcast %14 : vector<64x1xf32> to vector<64x8xf32>
    %31 = arith.mulf %29, %30 : vector<64x8xf32>
    %32 = tpu.concatenate %18, %31 in 1 : vector<64x64xf32>, vector<64x8xf32> -> vector<64x72xf32>
    %c0_15 = arith.constant 0 : index
    %c0_16 = arith.constant 0 : index
    %33 = vector.load %arg7[%c0_15, %c0_16] : memref<64x72xf32, #tpu.memory_space<vmem>>, vector<64x72xf32>
    tpu.vector_store %arg7[%c0_15, %c0_16], %32 {strides = array<i32>} : memref<64x72xf32, #tpu.memory_space<vmem>>, vector<64x72xf32>,
    return
  }
  func.func @transform_0(%arg0: i32) -> (i32, i32) {
    %c0_i32 = arith.constant 0 : i32
    %c0_i32_0 = arith.constant 0 : i32
    return %arg0, %c0_i32 : i32, i32
  }
  func.func @transform_1(%arg0: i32) -> (i32, i32) {
    %c0_i32 = arith.constant 0 : i32
    %c0_i32_0 = arith.constant 0 : i32
    return %arg0, %c0_i32 : i32, i32
  }
  func.func @transform_2(%arg0: i32) -> (i32, i32) {
    %c0_i32 = arith.constant 0 : i32
    %c0_i32_0 = arith.constant 0 : i32
    %c0_i32_1 = arith.constant 0 : i32
    return %c0_i32, %c0_i32_0 : i32, i32
  }
  func.func @transform_3(%arg0: i32) -> (i32, i32) {
    %c0_i32 = arith.constant 0 : i32
    %c0_i32_0 = arith.constant 0 : i32
    %c0_i32_1 = arith.constant 0 : i32
    return %c0_i32, %c0_i32_0 : i32, i32
  }
  func.func @transform_4(%arg0: i32) -> (i32, i32) {
    %c0_i32 = arith.constant 0 : i32
    %c0_i32_0 = arith.constant 0 : i32
    %c0_i32_1 = arith.constant 0 : i32
    return %c0_i32, %c0_i32_0 : i32, i32
  }
  func.func @transform_5(%arg0: i32) -> (i32, i32) {
    %c0_i32 = arith.constant 0 : i32
    %c0_i32_0 = arith.constant 0 : i32
    %c0_i32_1 = arith.constant 0 : i32
    return %c0_i32, %c0_i32_0 : i32, i32
  }
  func.func @transform_6(%arg0: i32) -> (i32, i32) {
    %c0_i32 = arith.constant 0 : i32
    %c0_i32_0 = arith.constant 0 : i32
    return %arg0, %c0_i32 : i32, i32
  }
}

</mosaic_0001>

<bundles_post_ra>
// kernel: tile.8
= control target key start
LH: loop header
LB: loop body
LE: loop exit
PB: predicated region body
PF: predicated region fallthrough
CT: control target
= control target key end

     0   :  { %s22_s0 = inlined_call_operand.vmem [shape: f32[32], index: 0, kind: input, shape index: {}]   ;;  %s23_s1 = inlined_call_operand.vmem [shape: f32[4,32], index: 1, kind: output, shape index: {}]  }
   0x1   :  { %v4_v0 = vld [vmem:[%s22_s0] ss:$0 sm:$0xff] }
   0x2   :  { %5 = vst [vmem:[%s23_s1] sm:$0xf] %v4_v0 }

// kernel: tile.0
= control target key start
LH: loop header
LB: loop body
LE: loop exit
PB: predicated region body
PF: predicated region fallthrough
CT: control target
= control target key end

     0   :  { %s546_s8 = smov 125   ;;  %s547_s9 = smov 126   ;;  %vm7_vm0 = vcmask 7168   ;;  %s1101_s0 = inlined_call_operand.vmem [shape: f32[4,32], index: 0, kind: input, shape index: {}]   ;;  %s1102_s1 = inlined_call_operand.vmem [shape: f32[128,1], index: 1, kind: output, shape index: {}]  }
   0x1   :  { %v4_v0 = vld [vmem:[%s1101_s0] sm:$0xf]  ;;  %s545_s0 = smov 127   ;;  %s548_s10 = smov 124  }
   0x2   :  { %5 = vst [vmem:[#allocation0] sm:$0xf] %v4_v0  ;;  %s549_s11 = smov 123   ;;  %s550_s12 = smov 122  }
   0x3   :  { %s551_s13 = smov 121   ;;  %s552_s14 = smov 120  }
   0x4   :  { %s553_s15 = smov 119   ;;  %s554_s16 = smov 118  }
   0x5   :  { %s555_s17 = smov 117   ;;  %s556_s18 = smov 116  }
   0x6   :  { %s557_s19 = smov 115   ;;  %s558_s20 = smov 114  }
   0x7   :  { %s559_s21 = smov 113   ;;  %s560_s22 = smov 112  }
   0x8   :  { %s561_s23 = smov 111   ;;  %s562_s24 = smov 110  }
   0x9   :  { %v15_v1 = vld [vmem:[#allocation0] sm:$0xf]   ;;  %s563_s25 = smov 109   ;;  %s564_s26 = smov 108  }
   0xa   :  { %v39_v2 = vld [vmem:[#allocation0] sm:$0xf]   ;;  %16 = vrot.lane.b32.xlu0 %v15_v1, %s545_s0  ;;  %s565_s27 = smov 107   ;;  %s566_s28 = smov 106  }
   0xb   :  { %40 = vrot.lane.b32.xlu1 %v39_v2, %s546_s8  ;;  %v27_v3 = vld [vmem:[#allocation0] sm:$0xf]   ;;  %s567_s29 = smov 105   ;;  %s568_s30 = smov 104  }
   0xc   :  { %v51_v4 = vld [vmem:[#allocation0] sm:$0xf]  }
   0xd   :  { %v63_v5 = vld [vmem:[#allocation0] sm:$0xf]  }
   0xe   :  { %28 = vrot.lane.b32.xlu0 %v27_v3, %s547_s9  ;;  %v75_v6 = vld [vmem:[#allocation0] sm:$0xf]   ;;  %s569_s9 = smov 103  }
   0xf   :  { %52 = vrot.lane.b32.xlu1 %v51_v4, %s548_s10  ;;  %v87_v7 = vld [vmem:[#allocation0] sm:$0xf]   ;;  %s570_s10 = smov 102  }
  0x10   :  { %v99_v8 = vld [vmem:[#allocation0] sm:$0xf]  }
  0x11   :  { %v111_v9 = vld [vmem:[#allocation0] sm:$0xf]  }
  0x12   :  { %64 = vrot.lane.b32.xlu0 %v63_v5, %s549_s11  ;;  %v123_v10 = vld [vmem:[#allocation0] sm:$0xf]   ;;  %s571_s11 = smov 101  }
  0x13   :  { %76 = vrot.lane.b32.xlu1 %v75_v6, %s550_s12  ;;  %v135_v11 = vld [vmem:[#allocation0] sm:$0xf]   ;;  %s572_s12 = smov 100  }
  0x14   :  { %v147_v12 = vld [vmem:[#allocation0] sm:$0xf]  }
  0x15   :  { %v159_v13 = vld [vmem:[#allocation0] sm:$0xf]  }
  0x16   :  { %88 = vrot.lane.b32.xlu0 %v87_v7, %s551_s13  ;;  %v171_v14 = vld [vmem:[#allocation0] sm:$0xf]   ;;  %s573_s13 = smov 99  }
  0x17   :  { %100 = vrot.lane.b32.xlu1 %v99_v8, %s552_s14  ;;  %v183_v15 = vld [vmem:[#allocation0] sm:$0xf]   ;;  %s574_s14 = smov 98  }
  0x18   :  { %v195_v16 = vld [vmem:[#allocation0] sm:$0xf]  }
  0x19   :  { %v207_v17 = vld [vmem:[#allocation0] sm:$0xf]  }
  0x1a   :  { %112 = vrot.lane.b32.xlu0 %v111_v9, %s553_s15  ;;  %v219_v18 = vld [vmem:[#allocation0] sm:$0xf]   ;;  %s575_s15 = smov 97  }
  0x1b   :  { %124 = vrot.lane.b32.xlu1 %v123_v10, %s554_s16  ;;  %v231_v19 = vld [vmem:[#allocation0] sm:$0xf]  }
  0x1c   :  { %v243_v20 = vld [vmem:[#allocation0] sm:$0xf]  }
  0x1d   :  { %v255_v21 = vld [vmem:[#allocation0] sm:$0xf]  }
  0x1e   :  { %136 = vrot.lane.b32.xlu0 %v135_v11, %s555_s17  ;;  %v267_v22 = vld [vmem:[#allocation0] sm:$0xf]  }
  0x1f   :  { %148 = vrot.lane.b32.xlu1 %v147_v12, %s556_s18  ;;  %v279_v23 = vld [vmem:[#allocation0] sm:$0xf]  }
  0x20   :  { %v291_v24 = vld [vmem:[#allocation0] sm:$0xf]  }
  0x21   :  { %v303_v25 = vld [vmem:[#allocation0] sm:$0xf]  }
  0x22   :  { %160 = vrot.lane.b32.xlu0 %v159_v13, %s557_s19  ;;  %v315_v26 = vld [vmem:[#allocation0] sm:$0xf]  }
  0x23   :  { %172 = vrot.lane.b32.xlu1 %v171_v14, %s558_s20  ;;  %v6_v27 = vld [vmem:[#allocation0] sm:$0xf]  }
  0x24   :  { %8 = vst.msk [vmem:[%s1102_s1] sm:$0x1] %vm7_vm0, %v6_v27   ;;  %387 = vst.msk [vmem:[%s1102_s1 + $0x1f] sm:$0x2] %vm7_vm0, %v6_v27   ;;  %v327_v28 = vld [vmem:[#allocation0] sm:$0xf]  }
  0x25   :  { %388 = vst.msk [vmem:[%s1102_s1 + $0x3e] sm:$0x4] %vm7_vm0, %v6_v27   ;;  %389 = vst.msk [vmem:[%s1102_s1 + $0x5d] sm:$0x8] %vm7_vm0, %v6_v27   ;;  %v339_v29 = vld [vmem:[#allocation0] sm:$0xf]  }
  0x26   :  { %184 = vrot.lane.b32.xlu0 %v183_v15, %s559_s21  ;;  %v351_v30 = vld [vmem:[#allocation0] sm:$0xf]  }
  0x27   :  { %196 = vrot.lane.b32.xlu1 %v195_v16, %s560_s22  ;;  %v363_v31 = vld [vmem:[#allocation0] sm:$0xf]  }
  0x28   :  { %v375_v32 = vld [vmem:[#allocation0] sm:$0xf]  }
  0x2a   :  { %208 = vrot.lane.b32.xlu0 %v207_v17, %s561_s23 }
  0x2b   :  { %220 = vrot.lane.b32.xlu1 %v219_v18, %s562_s24 }
  0x2e   :  { %232 = vrot.lane.b32.xlu0 %v231_v19, %s563_s25 }
  0x2f   :  { %244 = vrot.lane.b32.xlu1 %v243_v20, %s564_s26 }
  0x32   :  { %256 = vrot.lane.b32.xlu0 %v255_v21, %s565_s27 }
  0x33   :  { %268 = vrot.lane.b32.xlu1 %v267_v22, %s566_s28 }
  0x36   :  { %280 = vrot.lane.b32.xlu0 %v279_v23, %s567_s29 }
  0x37   :  { %292 = vrot.lane.b32.xlu1 %v291_v24, %s568_s30 }
  0x3a   :  { %304 = vrot.lane.b32.xlu0 %v303_v25, %s569_s9 }
  0x3b   :  { %316 = vrot.lane.b32.xlu1 %v315_v26, %s570_s10 }
  0x3e   :  { %328 = vrot.lane.b32.xlu0 %v327_v28, %s571_s11 }
  0x3f   :  { %340 = vrot.lane.b32.xlu1 %v339_v29, %s572_s12 }
  0x42   :  { %352 = vrot.lane.b32.xlu0 %v351_v30, %s573_s13 }
  0x43   :  { %364 = vrot.lane.b32.xlu1 %v363_v31, %s574_s14 }
  0x46   :  { %376 = vrot.lane.b32.xlu0 %v375_v32, %s575_s15 }
  0x7c   :  { %v17_v33 = vpop.permute.xlu0 %16  }
  0x7d   :  { %v41_v34 = vpop.permute.xlu1 %40   ;;  %390 = vst.msk [vmem:[%s1102_s1 + $0x1] sm:$0x1] %vm7_vm0, %v17_v33   ;;  %391 = vst.msk [vmem:[%s1102_s1 + $0x20] sm:$0x2] %vm7_vm0, %v17_v33  }
  0x7e   :  { %392 = vst.msk [vmem:[%s1102_s1 + $0x3f] sm:$0x4] %vm7_vm0, %v17_v33   ;;  %393 = vst.msk [vmem:[%s1102_s1 + $0x5e] sm:$0x8] %vm7_vm0, %v17_v33  }
  0x7f   :  { %398 = vst.msk [vmem:[%s1102_s1 + $0x3] sm:$0x1] %vm7_vm0, %v41_v34   ;;  %399 = vst.msk [vmem:[%s1102_s1 + $0x22] sm:$0x2] %vm7_vm0, %v41_v34  }
  0x80   :  { %400 = vst.msk [vmem:[%s1102_s1 + $0x41] sm:$0x4] %vm7_vm0, %v41_v34   ;;  %401 = vst.msk [vmem:[%s1102_s1 + $0x60] sm:$0x8] %vm7_vm0, %v41_v34   ;;  %v29_v35 = vpop.permute.xlu0 %28  }
  0x81   :  { %v53_v36 = vpop.permute.xlu1 %52   ;;  %394 = vst.msk [vmem:[%s1102_s1 + $0x2] sm:$0x1] %vm7_vm0, %v29_v35   ;;  %395 = vst.msk [vmem:[%s1102_s1 + $0x21] sm:$0x2] %vm7_vm0, %v29_v35  }
  0x82   :  { %396 = vst.msk [vmem:[%s1102_s1 + $0x40] sm:$0x4] %vm7_vm0, %v29_v35   ;;  %397 = vst.msk [vmem:[%s1102_s1 + $0x5f] sm:$0x8] %vm7_vm0, %v29_v35  }
  0x83   :  { %402 = vst.msk [vmem:[%s1102_s1 + $0x4] sm:$0x1] %vm7_vm0, %v53_v36   ;;  %403 = vst.msk [vmem:[%s1102_s1 + $0x23] sm:$0x2] %vm7_vm0, %v53_v36  }
  0x84   :  { %404 = vst.msk [vmem:[%s1102_s1 + $0x42] sm:$0x4] %vm7_vm0, %v53_v36   ;;  %405 = vst.msk [vmem:[%s1102_s1 + $0x61] sm:$0x8] %vm7_vm0, %v53_v36   ;;  %v65_v37 = vpop.permute.xlu0 %64  }
  0x85   :  { %v77_v38 = vpop.permute.xlu1 %76   ;;  %406 = vst.msk [vmem:[%s1102_s1 + $0x5] sm:$0x1] %vm7_vm0, %v65_v37   ;;  %407 = vst.msk [vmem:[%s1102_s1 + $0x24] sm:$0x2] %vm7_vm0, %v65_v37  }
  0x86   :  { %408 = vst.msk [vmem:[%s1102_s1 + $0x43] sm:$0x4] %vm7_vm0, %v65_v37   ;;  %409 = vst.msk [vmem:[%s1102_s1 + $0x62] sm:$0x8] %vm7_vm0, %v65_v37  }
  0x87   :  { %410 = vst.msk [vmem:[%s1102_s1 + $0x6] sm:$0x1] %vm7_vm0, %v77_v38   ;;  %411 = vst.msk [vmem:[%s1102_s1 + $0x25] sm:$0x2] %vm7_vm0, %v77_v38  }
  0x88   :  { %412 = vst.msk [vmem:[%s1102_s1 + $0x44] sm:$0x4] %vm7_vm0, %v77_v38   ;;  %413 = vst.msk [vmem:[%s1102_s1 + $0x63] sm:$0x8] %vm7_vm0, %v77_v38   ;;  %v89_v39 = vpop.permute.xlu0 %88  }
  0x89   :  { %v101_v40 = vpop.permute.xlu1 %100   ;;  %414 = vst.msk [vmem:[%s1102_s1 + $0x7] sm:$0x1] %vm7_vm0, %v89_v39   ;;  %415 = vst.msk [vmem:[%s1102_s1 + $0x26] sm:$0x2] %vm7_vm0, %v89_v39  }
  0x8a   :  { %416 = vst.msk [vmem:[%s1102_s1 + $0x45] sm:$0x4] %vm7_vm0, %v89_v39   ;;  %417 = vst.msk [vmem:[%s1102_s1 + $0x64] sm:$0x8] %vm7_vm0, %v89_v39  }
  0x8b   :  { %418 = vst.msk [vmem:[%s1102_s1 + $0x8] sm:$0x1] %vm7_vm0, %v101_v40   ;;  %419 = vst.msk [vmem:[%s1102_s1 + $0x27] sm:$0x2] %vm7_vm0, %v101_v40  }
  0x8c   :  { %420 = vst.msk [vmem:[%s1102_s1 + $0x46] sm:$0x4] %vm7_vm0, %v101_v40   ;;  %421 = vst.msk [vmem:[%s1102_s1 + $0x65] sm:$0x8] %vm7_vm0, %v101_v40   ;;  %v113_v41 = vpop.permute.xlu0 %112  }
  0x8d   :  { %v125_v42 = vpop.permute.xlu1 %124   ;;  %422 = vst.msk [vmem:[%s1102_s1 + $0x9] sm:$0x1] %vm7_vm0, %v113_v41   ;;  %423 = vst.msk [vmem:[%s1102_s1 + $0x28] sm:$0x2] %vm7_vm0, %v113_v41  }
  0x8e   :  { %424 = vst.msk [vmem:[%s1102_s1 + $0x47] sm:$0x4] %vm7_vm0, %v113_v41   ;;  %425 = vst.msk [vmem:[%s1102_s1 + $0x66] sm:$0x8] %vm7_vm0, %v113_v41  }
  0x8f   :  { %426 = vst.msk [vmem:[%s1102_s1 + $0xa] sm:$0x1] %vm7_vm0, %v125_v42   ;;  %427 = vst.msk [vmem:[%s1102_s1 + $0x29] sm:$0x2] %vm7_vm0, %v125_v42  }
  0x90   :  { %428 = vst.msk [vmem:[%s1102_s1 + $0x48] sm:$0x4] %vm7_vm0, %v125_v42   ;;  %429 = vst.msk [vmem:[%s1102_s1 + $0x67] sm:$0x8] %vm7_vm0, %v125_v42   ;;  %v137_v43 = vpop.permute.xlu0 %136  }
  0x91   :  { %v149_v44 = vpop.permute.xlu1 %148   ;;  %430 = vst.msk [vmem:[%s1102_s1 + $0xb] sm:$0x1] %vm7_vm0, %v137_v43   ;;  %431 = vst.msk [vmem:[%s1102_s1 + $0x2a] sm:$0x2] %vm7_vm0, %v137_v43  }
  0x92   :  { %432 = vst.msk [vmem:[%s1102_s1 + $0x49] sm:$0x4] %vm7_vm0, %v137_v43   ;;  %433 = vst.msk [vmem:[%s1102_s1 + $0x68] sm:$0x8] %vm7_vm0, %v137_v43  }
  0x93   :  { %434 = vst.msk [vmem:[%s1102_s1 + $0xc] sm:$0x1] %vm7_vm0, %v149_v44   ;;  %435 = vst.msk [vmem:[%s1102_s1 + $0x2b] sm:$0x2] %vm7_vm0, %v149_v44  }
  0x94   :  { %436 = vst.msk [vmem:[%s1102_s1 + $0x4a] sm:$0x4] %vm7_vm0, %v149_v44   ;;  %437 = vst.msk [vmem:[%s1102_s1 + $0x69] sm:$0x8] %vm7_vm0, %v149_v44   ;;  %v161_v45 = vpop.permute.xlu0 %160  }
  0x95   :  { %v173_v46 = vpop.permute.xlu1 %172   ;;  %438 = vst.msk [vmem:[%s1102_s1 + $0xd] sm:$0x1] %vm7_vm0, %v161_v45   ;;  %439 = vst.msk [vmem:[%s1102_s1 + $0x2c] sm:$0x2] %vm7_vm0, %v161_v45  }
  0x96   :  { %440 = vst.msk [vmem:[%s1102_s1 + $0x4b] sm:$0x4] %vm7_vm0, %v161_v45   ;;  %441 = vst.msk [vmem:[%s1102_s1 + $0x6a] sm:$0x8] %vm7_vm0, %v161_v45  }
  0x97   :  { %442 = vst.msk [vmem:[%s1102_s1 + $0xe] sm:$0x1] %vm7_vm0, %v173_v46   ;;  %443 = vst.msk [vmem:[%s1102_s1 + $0x2d] sm:$0x2] %vm7_vm0, %v173_v46  }
  0x98   :  { %444 = vst.msk [vmem:[%s1102_s1 + $0x4c] sm:$0x4] %vm7_vm0, %v173_v46   ;;  %445 = vst.msk [vmem:[%s1102_s1 + $0x6b] sm:$0x8] %vm7_vm0, %v173_v46   ;;  %v185_v47 = vpop.permute.xlu0 %184  }
  0x99   :  { %v197_v48 = vpop.permute.xlu1 %196   ;;  %446 = vst.msk [vmem:[%s1102_s1 + $0xf] sm:$0x1] %vm7_vm0, %v185_v47   ;;  %447 = vst.msk [vmem:[%s1102_s1 + $0x2e] sm:$0x2] %vm7_vm0, %v185_v47  }
  0x9a   :  { %448 = vst.msk [vmem:[%s1102_s1 + $0x4d] sm:$0x4] %vm7_vm0, %v185_v47   ;;  %449 = vst.msk [vmem:[%s1102_s1 + $0x6c] sm:$0x8] %vm7_vm0, %v185_v47  }
  0x9b   :  { %450 = vst.msk [vmem:[%s1102_s1 + $0x10] sm:$0x1] %vm7_vm0, %v197_v48   ;;  %451 = vst.msk [vmem:[%s1102_s1 + $0x2f] sm:$0x2] %vm7_vm0, %v197_v48  }
  0x9c   :  { %452 = vst.msk [vmem:[%s1102_s1 + $0x4e] sm:$0x4] %vm7_vm0, %v197_v48   ;;  %453 = vst.msk [vmem:[%s1102_s1 + $0x6d] sm:$0x8] %vm7_vm0, %v197_v48   ;;  %v209_v49 = vpop.permute.xlu0 %208  }
  0x9d   :  { %v221_v50 = vpop.permute.xlu1 %220   ;;  %454 = vst.msk [vmem:[%s1102_s1 + $0x11] sm:$0x1] %vm7_vm0, %v209_v49   ;;  %455 = vst.msk [vmem:[%s1102_s1 + $0x30] sm:$0x2] %vm7_vm0, %v209_v49  }
  0x9e   :  { %456 = vst.msk [vmem:[%s1102_s1 + $0x4f] sm:$0x4] %vm7_vm0, %v209_v49   ;;  %457 = vst.msk [vmem:[%s1102_s1 + $0x6e] sm:$0x8] %vm7_vm0, %v209_v49  }
  0x9f   :  { %458 = vst.msk [vmem:[%s1102_s1 + $0x12] sm:$0x1] %vm7_vm0, %v221_v50   ;;  %459 = vst.msk [vmem:[%s1102_s1 + $0x31] sm:$0x2] %vm7_vm0, %v221_v50  }
  0xa0   :  { %460 = vst.msk [vmem:[%s1102_s1 + $0x50] sm:$0x4] %vm7_vm0, %v221_v50   ;;  %461 = vst.msk [vmem:[%s1102_s1 + $0x6f] sm:$0x8] %vm7_vm0, %v221_v50   ;;  %v233_v51 = vpop.permute.xlu0 %232  }
  0xa1   :  { %v245_v52 = vpop.permute.xlu1 %244   ;;  %462 = vst.msk [vmem:[%s1102_s1 + $0x13] sm:$0x1] %vm7_vm0, %v233_v51   ;;  %463 = vst.msk [vmem:[%s1102_s1 + $0x32] sm:$0x2] %vm7_vm0, %v233_v51  }
  0xa2   :  { %464 = vst.msk [vmem:[%s1102_s1 + $0x51] sm:$0x4] %vm7_vm0, %v233_v51   ;;  %465 = vst.msk [vmem:[%s1102_s1 + $0x70] sm:$0x8] %vm7_vm0, %v233_v51  }
  0xa3   :  { %466 = vst.msk [vmem:[%s1102_s1 + $0x14] sm:$0x1] %vm7_vm0, %v245_v52   ;;  %467 = vst.msk [vmem:[%s1102_s1 + $0x33] sm:$0x2] %vm7_vm0, %v245_v52  }
  0xa4   :  { %468 = vst.msk [vmem:[%s1102_s1 + $0x52] sm:$0x4] %vm7_vm0, %v245_v52   ;;  %469 = vst.msk [vmem:[%s1102_s1 + $0x71] sm:$0x8] %vm7_vm0, %v245_v52   ;;  %v257_v53 = vpop.permute.xlu0 %256  }
  0xa5   :  { %v269_v54 = vpop.permute.xlu1 %268   ;;  %470 = vst.msk [vmem:[%s1102_s1 + $0x15] sm:$0x1] %vm7_vm0, %v257_v53   ;;  %471 = vst.msk [vmem:[%s1102_s1 + $0x34] sm:$0x2] %vm7_vm0, %v257_v53  }
  0xa6   :  { %472 = vst.msk [vmem:[%s1102_s1 + $0x53] sm:$0x4] %vm7_vm0, %v257_v53   ;;  %473 = vst.msk [vmem:[%s1102_s1 + $0x72] sm:$0x8] %vm7_vm0, %v257_v53  }
  0xa7   :  { %474 = vst.msk [vmem:[%s1102_s1 + $0x16] sm:$0x1] %vm7_vm0, %v269_v54   ;;  %475 = vst.msk [vmem:[%s1102_s1 + $0x35] sm:$0x2] %vm7_vm0, %v269_v54  }
  0xa8   :  { %476 = vst.msk [vmem:[%s1102_s1 + $0x54] sm:$0x4] %vm7_vm0, %v269_v54   ;;  %477 = vst.msk [vmem:[%s1102_s1 + $0x73] sm:$0x8] %vm7_vm0, %v269_v54   ;;  %v281_v55 = vpop.permute.xlu0 %280  }
  0xa9   :  { %v293_v56 = vpop.permute.xlu1 %292   ;;  %478 = vst.msk [vmem:[%s1102_s1 + $0x17] sm:$0x1] %vm7_vm0, %v281_v55   ;;  %479 = vst.msk [vmem:[%s1102_s1 + $0x36] sm:$0x2] %vm7_vm0, %v281_v55  }
  0xaa   :  { %480 = vst.msk [vmem:[%s1102_s1 + $0x55] sm:$0x4] %vm7_vm0, %v281_v55   ;;  %481 = vst.msk [vmem:[%s1102_s1 + $0x74] sm:$0x8] %vm7_vm0, %v281_v55  }
  0xab   :  { %482 = vst.msk [vmem:[%s1102_s1 + $0x18] sm:$0x1] %vm7_vm0, %v293_v56   ;;  %483 = vst.msk [vmem:[%s1102_s1 + $0x37] sm:$0x2] %vm7_vm0, %v293_v56  }
  0xac   :  { %484 = vst.msk [vmem:[%s1102_s1 + $0x56] sm:$0x4] %vm7_vm0, %v293_v56   ;;  %485 = vst.msk [vmem:[%s1102_s1 + $0x75] sm:$0x8] %vm7_vm0, %v293_v56   ;;  %v305_v57 = vpop.permute.xlu0 %304  }
  0xad   :  { %v317_v58 = vpop.permute.xlu1 %316   ;;  %486 = vst.msk [vmem:[%s1102_s1 + $0x19] sm:$0x1] %vm7_vm0, %v305_v57   ;;  %487 = vst.msk [vmem:[%s1102_s1 + $0x38] sm:$0x2] %vm7_vm0, %v305_v57  }
  0xae   :  { %488 = vst.msk [vmem:[%s1102_s1 + $0x57] sm:$0x4] %vm7_vm0, %v305_v57   ;;  %489 = vst.msk [vmem:[%s1102_s1 + $0x76] sm:$0x8] %vm7_vm0, %v305_v57  }
  0xaf   :  { %490 = vst.msk [vmem:[%s1102_s1 + $0x1a] sm:$0x1] %vm7_vm0, %v317_v58   ;;  %491 = vst.msk [vmem:[%s1102_s1 + $0x39] sm:$0x2] %vm7_vm0, %v317_v58  }
  0xb0   :  { %492 = vst.msk [vmem:[%s1102_s1 + $0x58] sm:$0x4] %vm7_vm0, %v317_v58   ;;  %493 = vst.msk [vmem:[%s1102_s1 + $0x77] sm:$0x8] %vm7_vm0, %v317_v58   ;;  %v329_v59 = vpop.permute.xlu0 %328  }
  0xb1   :  { %v341_v60 = vpop.permute.xlu1 %340   ;;  %494 = vst.msk [vmem:[%s1102_s1 + $0x1b] sm:$0x1] %vm7_vm0, %v329_v59   ;;  %495 = vst.msk [vmem:[%s1102_s1 + $0x3a] sm:$0x2] %vm7_vm0, %v329_v59  }
  0xb2   :  { %496 = vst.msk [vmem:[%s1102_s1 + $0x59] sm:$0x4] %vm7_vm0, %v329_v59   ;;  %497 = vst.msk [vmem:[%s1102_s1 + $0x78] sm:$0x8] %vm7_vm0, %v329_v59  }
  0xb3   :  { %498 = vst.msk [vmem:[%s1102_s1 + $0x1c] sm:$0x1] %vm7_vm0, %v341_v60   ;;  %499 = vst.msk [vmem:[%s1102_s1 + $0x3b] sm:$0x2] %vm7_vm0, %v341_v60  }
  0xb4   :  { %500 = vst.msk [vmem:[%s1102_s1 + $0x5a] sm:$0x4] %vm7_vm0, %v341_v60   ;;  %501 = vst.msk [vmem:[%s1102_s1 + $0x79] sm:$0x8] %vm7_vm0, %v341_v60   ;;  %v353_v61 = vpop.permute.xlu0 %352  }
  0xb5   :  { %v365_v62 = vpop.permute.xlu1 %364   ;;  %502 = vst.msk [vmem:[%s1102_s1 + $0x1d] sm:$0x1] %vm7_vm0, %v353_v61   ;;  %503 = vst.msk [vmem:[%s1102_s1 + $0x3c] sm:$0x2] %vm7_vm0, %v353_v61  }
  0xb6   :  { %504 = vst.msk [vmem:[%s1102_s1 + $0x5b] sm:$0x4] %vm7_vm0, %v353_v61   ;;  %505 = vst.msk [vmem:[%s1102_s1 + $0x7a] sm:$0x8] %vm7_vm0, %v353_v61  }
  0xb7   :  { %506 = vst.msk [vmem:[%s1102_s1 + $0x1e] sm:$0x1] %vm7_vm0, %v365_v62   ;;  %507 = vst.msk [vmem:[%s1102_s1 + $0x3d] sm:$0x2] %vm7_vm0, %v365_v62  }
  0xb8   :  { %508 = vst.msk [vmem:[%s1102_s1 + $0x5c] sm:$0x4] %vm7_vm0, %v365_v62   ;;  %509 = vst.msk [vmem:[%s1102_s1 + $0x7b] sm:$0x8] %vm7_vm0, %v365_v62   ;;  %v377_v63 = vpop.permute.xlu0 %376  }
  0xb9   :  { %510 = vst.msk [vmem:[%s1102_s1 + $0x1f] sm:$0x1] %vm7_vm0, %v377_v63   ;;  %511 = vst.msk [vmem:[%s1102_s1 + $0x3e] sm:$0x2] %vm7_vm0, %v377_v63  }
  0xba   :  { %512 = vst.msk [vmem:[%s1102_s1 + $0x5d] sm:$0x4] %vm7_vm0, %v377_v63   ;;  %513 = vst.msk [vmem:[%s1102_s1 + $0x7c] sm:$0x8] %vm7_vm0, %v377_v63  }

// kernel: forward.1
= control target key start
LH: loop header
LB: loop body
LE: loop exit
PB: predicated region body
PF: predicated region fallthrough
CT: control target
= control target key end

     0   :  { %s1137_s21 = smov 0   ;;  %s1383_s0 = inlined_call_operand.vmem [shape: bf16[128,12], index: 0, kind: input, shape index: {}]   ;;  %s1384_s1 = inlined_call_operand.vmem [shape: f32[128,1], index: 1, kind: input, shape index: {}]   ;;  %s1385_s2 = inlined_call_operand.vmem [shape: bf16[24,128], index: 2, kind: input, shape index: {}]   ;;  %s1386_s3 = inlined_call_operand.vmem [shape: f32[1,128], index: 3, kind: input, shape index: {}]   ;;  %s1387_s4 = inlined_call_operand.vmem [shape: bf16[128,8], index: 4, kind: input, shape index: {}]   ;;  %s1388_s5 = inlined_call_operand.vmem [shape: f32[1,8], index: 5, kind: input, shape index: {}]   ;;  %s1389_s6 = inlined_call_operand.vmem [shape: f32[128,72], index: 6, kind: output, shape index: {}]  }
   0x1 LB: > { %s925_s22 = sadd.s32 4294967295, %s1097_s21   ;;  %p929_p0 = scmp.ge.s32.totalorder %s1097_s21, 1  ;;  %s1097_s21 = sphi %s1137_s21, %s16_s21  }
   0x2   : > { %p224_p1 = scmp.lt.s32.totalorder %s1097_s21, 3 }
   0x4   : > { %p225_p2 = pnand %p929_p0, %p224_p1 }
   0x5   : > { %s930_s23 = sshll.u32 (!%p225_p2), %s925_s22, 3  ;;  %v1081_v0 = vld [vmem:[%s1385_s2] sm:$0xff] (!%p225_p2)   ;;  %v1082_v1 = vld [vmem:[%s1385_s2 + $0x8] ss:$0 sps:$4 sm:$0xff] (!%p225_p2)   ;;  %vm390_vm0 = vcmask (!%p225_p2), 1043456   ;;  %vm302_vm1 = vcmask (!%p225_p2), 1046528  }
   0x6   : > { %228 = sbr.rel (%p225_p2) target bundleno = 958 (0x3be), region = 44  ;;  %p260_p3 = scmp.lt.s32.totalorder (!%p225_p2), %s930_s23, 15  ;;  %991 = vmatprep.subr.bf16.mxu0 (!%p225_p2), %v1081_v0  ;;  %v392_v5 = vsel (!%p225_p2), %vm390_vm0, %v1082_v1, 0  ;;  %v1100_v35 = vmov (!%p225_p2), 0   ;;  %vm345_vm2 = vcmask (!%p225_p2), 97280   ;;  %vm377_vm3 = vcmask (!%p225_p2), 195584  }
   0x7   : > { %992 = vmatpush3.bf16.msra.mxu0 (!%p225_p2), %v1081_v0  ;;  %s1099_s8 = smov (!%p225_p2), 12   ;;  %1059 = vset.pattern.permute.xlu0 (!%p225_p2), %v1100_v35  ;;  %s1101_s15 = smov (!%p225_p2), 64   ;;  %vm619_vm4 = vcmask (!%p225_p2), 523264   ;;  %vm848_vm5 = vcmask (!%p225_p2), 588800  }
   0x8   : > { %1027 = vmatprep.subr.msk.bf16.mxu0 (!%p225_p2), %vm390_vm0, %v1082_v1  ;;  %1060 = vset.pattern.permute.xlu1 (!%p225_p2), %v1100_v35 }
   0xb   : > { %994 = vmatpush3.bf16.msra.mxu0 (!%p225_p2), %v392_v5 }
   0xd   : > { %s1391_s23 = smov (!%p260_p3, %s930_s23), 15 }
   0xe   : > { %s931_s26 = sshll.u32 %s1391_s23, 2  ;;  %s933_s9 = sshll.u32 %s1391_s23, 3 }
   0xf   : > { %s263_s7 = scalar_lea.vmem %s1383_s0, %s931_s26  ;;  %s269_s12 = scalar_lea.vmem %s1384_s1, %s933_s9 }
  0x10   : > { %v1157_v2 = vld [vmem:[%s263_s7] sm:$0xff]   ;;  %v1159_v3 = vld [vmem:[%s263_s7 + $0x8] sm:$0xff]   ;;  %v1161_v4 = vld [vmem:[%s263_s7 + $0x10] sm:$0xff]   ;;  %s275_s16 = scalar_lea.vmem %s1389_s6, %s933_s9 }
  0x11   : > { %v956_v6 = vunpack.c.l.bf16 %v1157_v2  ;;  %v957_v7 = vunpack.c.h.bf16 %v1157_v2  ;;  %v960_v8 = vunpack.c.l.bf16 %v1159_v3  ;;  %v961_v9 = vunpack.c.h.bf16 %v1159_v3  ;;  %v1167_v10 = vld [vmem:[%s263_s7 + $0x18] sm:$0xff]   ;;  %v467_v36 = vld [vmem:[%s269_s12] sm:$0xff]  ;;  %v468_v37 = vld [vmem:[%s269_s12 + $0x8] sm:$0xff] }
  0x12   : > { %v964_v11 = vunpack.c.l.bf16 %v1161_v4  ;;  %v965_v12 = vunpack.c.h.bf16 %v1161_v4  ;;  %v968_v13 = vunpack.c.l.bf16 %v1167_v10  ;;  %v969_v14 = vunpack.c.h.bf16 %v1167_v10  ;;  %v470_v38 = vld [vmem:[%s269_s12 + $0x18] sm:$0xff]  ;;  %v469_v39 = vld [vmem:[%s269_s12 + $0x10] sm:$0xff]  ;;  %v472_v40 = vld [vmem:[%s269_s12 + $0x28] sm:$0xff] }
  0x13   : > { %v303_v15 = vrot.slane %v956_v6, 1  ;;  %v304_v16 = vrot.slane %v957_v7, 1  ;;  %v306_v17 = vrot.slane %v960_v8, 1  ;;  %v308_v18 = vrot.slane %v961_v9, 1  ;;  %v471_v41 = vld [vmem:[%s269_s12 + $0x20] sm:$0xff]  ;;  %v474_v42 = vld [vmem:[%s269_s12 + $0x38] sm:$0xff] }
  0x14   : > { %v310_v19 = vrot.slane %v964_v11, 1  ;;  %v312_v20 = vrot.slane %v965_v12, 1  ;;  %v314_v21 = vrot.slane %v968_v13, 1  ;;  %v316_v22 = vrot.slane %v969_v14, 1  ;;  %v473_v43 = vld [vmem:[%s269_s12 + $0x30] sm:$0xff] }
  0x15   : > { %v305_v23 = vsel %vm302_vm1, %v303_v15, %v304_v16  ;;  %v307_v24 = vsel %vm302_vm1, %v304_v16, %v306_v17  ;;  %v309_v25 = vsel %vm302_vm1, %v306_v17, %v308_v18  ;;  %v936_v3 = vld [vmem:[%s1386_s3] ss:$0 sm:$0xff] }
  0x16   : > { %v1039_v26 = vpack.i.bf16 %v307_v24, %v305_v23  ;;  %v311_v27 = vsel %vm302_vm1, %v308_v18, %v310_v19  ;;  %v313_v28 = vsel %vm302_vm1, %v310_v19, %v312_v20  ;;  %v315_v29 = vsel %vm302_vm1, %v312_v20, %v314_v21 }
  0x17   : > { %v1049_v30 = vpack.i.bf16 %v315_v29, %v313_v28  ;;  %v317_v31 = vsel %vm302_vm1, %v314_v21, %v316_v22  ;;  %v319_v32 = vsel %vm302_vm1, %v316_v22, 0.0  ;;  %v1044_v33 = vpack.i.bf16 %v311_v27, %v309_v25  ;;  %v1083_v29 = vld [vmem:[%s1387_s4] sm:$0xff]  }
  0x18   : > { %1040 = vrot.lane.b32.xlu0 %v1039_v26, %s1099_s8  ;;  %v1054_v34 = vpack.i.bf16 %v319_v32, %v317_v31  ;;  %1003 = vmatprep.subr.bf16.mxu1 %v1083_v29  ;;  %v1085_v31 = vld [vmem:[%s1387_s4 + $0x10] sm:$0xff]   ;;  %v1086_v32 = vld [vmem:[%s1387_s4 + $0x18] sm:$0xff]  }
  0x19   : > { %1050 = vrot.lane.b32.xlu1 %v1049_v30, %s1099_s8  ;;  %v1084_v30 = vld [vmem:[%s1387_s4 + $0x8] sm:$0xff]   ;;  %1004 = vmatpush3.bf16.msra.mxu1 %v1083_v29 }
  0x1a   : > { %1005 = vmatprep.subr.bf16.mxu1 %v1084_v30 }
  0x1c   : > { %1045 = vrot.lane.b32.xlu0 %v1044_v33, %s1099_s8  ;;  %v1087_v33 = vld [vmem:[%s1387_s4 + $0x20] sm:$0xff]  }
  0x1d   : > { %1055 = vrot.lane.b32.xlu1 %v1054_v34, %s1099_s8  ;;  %1006 = vmatpush3.bf16.msra.mxu1 %v1084_v30  ;;  %v1088_v34 = vld [vmem:[%s1387_s4 + $0x28] sm:$0xff]  }
  0x1e   : > { %1007 = vmatprep.subr.bf16.mxu1 %v1085_v31 }
  0x20   : > { %477 = vperm.xlu0 %1059, %v467_v36  }
  0x21   : > { %482 = vperm.xlu1 %1060, %v468_v37   ;;  %1008 = vmatpush3.bf16.msra.mxu1 %v1085_v31 }
  0x22   : > { %1009 = vmatprep.subr.bf16.mxu1 %v1086_v32 }
  0x24   : > { %492 = vperm.xlu0 %1059, %v470_v38  }
  0x25   : > { %487 = vperm.xlu1 %1060, %v469_v39   ;;  %1010 = vmatpush3.bf16.msra.mxu1 %v1086_v32 }
  0x26   : > { %1011 = vmatprep.subr.bf16.mxu1 %v1087_v33 }
  0x28   : > { %502 = vperm.xlu0 %1059, %v472_v40  }
  0x29   : > { %497 = vperm.xlu1 %1060, %v471_v41   ;;  %1012 = vmatpush3.bf16.msra.mxu1 %v1087_v33  ;;  %v1089_v41 = vld [vmem:[%s1387_s4 + $0x30] sm:$0xff]  }
  0x2a   : > { %1013 = vmatprep.subr.bf16.mxu1 %v1088_v34 }
  0x2c   : > { %512 = vperm.xlu0 %1059, %v474_v42  }
  0x2d   : > { %507 = vperm.xlu1 %1060, %v473_v43   ;;  %1014 = vmatpush3.bf16.msra.mxu1 %v1088_v34  ;;  %v1090_v43 = vld [vmem:[%s1387_s4 + $0x38] sm:$0xff]  }
  0x2e   : > { %1015 = vmatprep.subr.bf16.mxu1 %v1089_v41 }
  0x31   : > { %1016 = vmatpush3.bf16.msra.mxu1 %v1089_v41 }
  0x32   : > { %1017 = vmatprep.subr.bf16.mxu1 %v1090_v43 }
  0x35   : > { %1018 = vmatpush3.bf16.msra.mxu1 %v1090_v43 }
  0x8a   : > { %v1041_v44 = vpop.permute.xlu0 %1040 }
  0x8b   : > { %v1043_v45 = vunpack.i.h.bf16 %v1041_v44  ;;  %v1042_v46 = vunpack.i.l.bf16 %v1041_v44  ;;  %v1051_v47 = vpop.permute.xlu1 %1050 }
  0x8c   : > { %v1053_v48 = vunpack.i.h.bf16 %v1051_v47  ;;  %v1052_v49 = vunpack.i.l.bf16 %v1051_v47 }
  0x8d   : > { %v346_v50 = vsel %vm345_vm2, %v956_v6, %v1042_v46  ;;  %v347_v51 = vsel %vm345_vm2, %v957_v7, %v1043_v45 }
  0x8e   : > { %v1046_v52 = vpop.permute.xlu0 %1045  ;;  %v354_v53 = vpack.c.bf16 %v347_v51, %v346_v50  ;;  %v351_v54 = vsel %vm345_vm2, %v965_v12, %v1053_v48  ;;  %v350_v55 = vsel %vm345_vm2, %v964_v11, %v1052_v49 }
  0x8f   : > { %v1048_v56 = vunpack.i.h.bf16 %v1046_v52  ;;  %v1047_v57 = vunpack.i.l.bf16 %v1046_v52  ;;  %v1056_v58 = vpop.permute.xlu1 %1055  ;;  %v356_v59 = vpack.c.bf16 %v351_v54, %v350_v55 }
  0x90   : > { %995 = vmatprep.mubr.msk.bf16.mxu0 %vm377_vm3, %v354_v53  ;;  %v1058_v62 = vunpack.i.h.bf16 %v1056_v58  ;;  %v1057_v63 = vunpack.i.l.bf16 %v1056_v58 }
  0x91   : > { %v349_v60 = vsel %vm345_vm2, %v961_v9, %v1048_v56  ;;  %v348_v61 = vsel %vm345_vm2, %v960_v8, %v1047_v57 }
  0x92   : > { %v355_v0 = vpack.c.bf16 %v349_v60, %v348_v61  ;;  %v353_v1 = vsel %vm345_vm2, %v969_v14, %v1058_v62  ;;  %v352_v2 = vsel %vm345_vm2, %v968_v13, %v1057_v63 }
  0x93   : > { %v357_v4 = vpack.c.bf16 %v353_v1, %v352_v2 }
  0x94   : > { %996 = vmatmul.mubr.msk.bf16.vlgmr.msra.gmra.mrb[0].mxu0 %vm377_vm3, %v355_v0 }
  0x95   : > { %999 = vmatprep.mubr.msk.bf16.mxu0 %vm377_vm3, %v356_v59 }
  0x9c   : > { %1000 = vmatmul.mubr.msk.bf16.gmra.mrb[4].mxu0 %vm377_vm3, %v357_v4 }
  0x9f   : > { %v1280_v36 = vpop.permute.xlu0 %477 }
  0xa0   : > { %v1278_v35 = vpop.permute.xlu1 %482 }
  0xa3   : > { %v1284_v38 = vpop.permute.xlu0 %492 }
  0xa4   : > { %v1282_v37 = vpop.permute.xlu1 %487 }
  0xa7   : > { %v1288_v40 = vpop.permute.xlu0 %502 }
  0xa8   : > { %v1286_v39 = vpop.permute.xlu1 %497 }
  0xab   : > { %v1298_v44 = vpop.permute.xlu0 %512 }
  0xac   : > { %v1293_v42 = vpop.permute.xlu1 %507 }
 0x167   : > { %v997_v5 = vpop.f32.mrb[0].mxu0 }
 0x168   : > { %v428_v6 = vpop.f32.mrb[1].mxu0  ;;  %v1230_v11 = vadd.f32 %v997_v5, %v936_v3 }
 0x169   : > { %v429_v7 = vadd.f32 %v936_v3, %v428_v6  ;;  %v998_v8 = vpop.f32.mrb[2].mxu0 }
 0x16a   : > { %v431_v9 = vpop.f32.mrb[3].mxu0  ;;  %v1232_v14 = vadd.f32 %v998_v8, %v936_v3  ;;  %v461_v15 = vmax.f32 %v1230_v11, 0.0 }
 0x16b   : > { %v459_v12 = vmax.f32 %v429_v7, 0.0  ;;  %v432_v10 = vadd.f32 %v936_v3, %v431_v9 }
 0x16c   : > { %v462_v18 = vmax.f32 %v1232_v14, 0.0  ;;  %v517_v50 = vmul.f32 %v1282_v37, %v461_v15 }
 0x16d   : > { %v460_v13 = vmax.f32 %v432_v10, 0.0  ;;  %531 = vrot.lane.b32.xlu1 %v459_v12, %s1101_s15  ;;  %v515_v45 = vmul.f32 %v1280_v36, %v459_v12 }
 0x16e   : > { %v518_v52 = vmul.f32 %v1284_v38, %v462_v18 }
 0x16f   : > { %v1001_v16 = vpop.f32.mrb[4].mxu0  ;;  %533 = vrot.lane.b32.xlu0 %v460_v13, %s1101_s15  ;;  %v516_v48 = vmul.f32 %v1278_v35, %v460_v13 }
 0x170   : > { %v444_v17 = vpop.f32.mrb[5].mxu0  ;;  %v1241_v22 = vadd.f32 %v1001_v16, %v936_v3 }
 0x171   : > { %v1238_v19 = vadd.f32 %v936_v3, %v444_v17  ;;  %v1002_v20 = vpop.f32.mrb[6].mxu0  ;;  %535 = vrot.lane.b32.xlu1 %v461_v15, %s1101_s15 }
 0x172   : > { %v447_v21 = vpop.f32.mrb[7].mxu0  ;;  %v1247_v25 = vadd.f32 %v1002_v20, %v936_v3  ;;  %v465_v27 = vmax.f32 %v1241_v22, 0.0 }
 0x173   : > { %v463_v23 = vmax.f32 %v1238_v19, 0.0  ;;  %v1244_v24 = vadd.f32 %v936_v3, %v447_v21  ;;  %537 = vrot.lane.b32.xlu0 %v462_v18, %s1101_s15 }
 0x174   : > { %v466_v28 = vmax.f32 %v1247_v25, 0.0  ;;  %v521_v6 = vmul.f32 %v1293_v42, %v465_v27 }
 0x175   : > { %v464_v26 = vmax.f32 %v1244_v24, 0.0  ;;  %539 = vrot.lane.b32.xlu1 %v463_v23, %s1101_s15  ;;  %v519_v61 = vmul.f32 %v1286_v39, %v463_v23 }
 0x176   : > { %v522_v11 = vmul.f32 %v1298_v44, %v466_v28 }
 0x177   : > { %541 = vrot.lane.b32.xlu0 %v464_v26, %s1101_s15  ;;  %v520_v0 = vmul.f32 %v1288_v40, %v464_v26 }
 0x179   : > { %543 = vrot.lane.b32.xlu1 %v465_v27, %s1101_s15 }
 0x17b   : > { %545 = vrot.lane.b32.xlu0 %v466_v28, %s1101_s15 }
 0x1df   : > { %v532_v46 = vpop.permute.xlu1 %531 }
 0x1e0   : > { %v555_v47 = vmul.f32 %v532_v46, %v515_v45 }
 0x1e1   : > { %v534_v49 = vpop.permute.xlu0 %533 }
 0x1e2   : > { %v556_v51 = vmul.f32 %v534_v49, %v516_v48  ;;  %v571_v54 = vrot.slane %v555_v47, 1 }
 0x1e3   : > { %v536_v53 = vpop.permute.xlu1 %535 }
 0x1e4   : > { %v572_v55 = vrot.slane %v556_v51, 1  ;;  %v1061_v56 = vpack.i.bf16 %v556_v51, %v555_v47  ;;  %v557_v57 = vmul.f32 %v536_v53, %v517_v50 }
 0x1e5   : > { %v538_v58 = vpop.permute.xlu0 %537 }
 0x1e6   : > { %v574_v59 = vrot.slane %v557_v57, 1  ;;  %v558_v60 = vmul.f32 %v538_v58, %v518_v52  ;;  %1062 = vrot.lane.b32.xlu1 %v1061_v56, %s1101_s15  ;;  %v573_v62 = vsel %vm302_vm1, %v571_v54, %v572_v55 }
 0x1e7   : > { %v540_v63 = vpop.permute.xlu1 %539 }
 0x1e8   : > { %v576_v1 = vrot.slane %v558_v60, 1  ;;  %v1066_v2 = vpack.i.bf16 %v558_v60, %v557_v57  ;;  %v559_v4 = vmul.f32 %v540_v63, %v519_v61  ;;  %v575_v3 = vsel %vm302_vm1, %v572_v55, %v574_v59  ;;  %v943_v57 = vld [vmem:[%s1388_s5] ss:$0 sm:$0xff] }
 0x1e9   : > { %v542_v5 = vpop.permute.xlu0 %541 }
 0x1ea   : > { %v577_v7 = vsel %vm302_vm1, %v574_v59, %v576_v1  ;;  %v578_v8 = vrot.slane %v559_v4, 1  ;;  %v560_v9 = vmul.f32 %v542_v5, %v520_v0  ;;  %1067 = vrot.lane.b32.xlu0 %v1066_v2, %s1101_s15 }
 0x1eb   : > { %v544_v12 = vpop.permute.xlu1 %543 }
 0x1ec   : > { %v579_v10 = vsel %vm302_vm1, %v576_v1, %v578_v8  ;;  %v580_v14 = vrot.slane %v560_v9, 1  ;;  %v1071_v13 = vpack.i.bf16 %v560_v9, %v559_v4  ;;  %v561_v15 = vmul.f32 %v544_v12, %v521_v6 }
 0x1ed   : > { %v546_v16 = vpop.permute.xlu0 %545 }
 0x1ee   : > { %v581_v17 = vsel %vm302_vm1, %v578_v8, %v580_v14  ;;  %v582_v18 = vrot.slane %v561_v15, 1  ;;  %v562_v19 = vmul.f32 %v546_v16, %v522_v11  ;;  %1072 = vrot.lane.b32.xlu1 %v1071_v13, %s1101_s15 }
 0x1f0   : > { %v583_v20 = vsel %vm302_vm1, %v580_v14, %v582_v18  ;;  %v584_v21 = vrot.slane %v562_v19, 1  ;;  %v1076_v22 = vpack.i.bf16 %v562_v19, %v561_v15 }
 0x1f2   : > { %v585_v23 = vsel %vm302_vm1, %v582_v18, %v584_v21  ;;  %1077 = vrot.lane.b32.xlu0 %v1076_v22, %s1101_s15  ;;  %784 = vrot.lane.b32.xlu1 %v515_v45, %s1101_s15  ;;  %v594_v53 = vsel %vm302_vm1, %v584_v21, 0.0 }
 0x1f6   : > { %786 = vrot.lane.b32.xlu0 %v516_v48, %s1101_s15  ;;  %788 = vrot.lane.b32.xlu1 %v517_v50, %s1101_s15 }
 0x1fa   : > { %790 = vrot.lane.b32.xlu0 %v518_v52, %s1101_s15  ;;  %792 = vrot.lane.b32.xlu1 %v519_v61, %s1101_s15 }
 0x1fe   : > { %794 = vrot.lane.b32.xlu0 %v520_v0, %s1101_s15  ;;  %796 = vrot.lane.b32.xlu1 %v521_v6, %s1101_s15 }
 0x202   : > { %798 = vrot.lane.b32.xlu0 %v522_v11, %s1101_s15 }
 0x258   : > { %v1063_v24 = vpop.permute.xlu1 %1062 }
 0x259   : > { %v1065_v25 = vunpack.i.h.bf16 %v1063_v24  ;;  %v1064_v26 = vunpack.i.l.bf16 %v1063_v24 }
 0x25b   : > { %v620_v27 = vsel %vm619_vm4, %v1064_v26, %v573_v62  ;;  %v621_v28 = vsel %vm619_vm4, %v1065_v25, %v575_v3 }
 0x25c   : > { %v1068_v29 = vpop.permute.xlu0 %1067  ;;  %v628_v30 = vpack.c.bf16 %v621_v28, %v620_v27 }
 0x25d   : > { %v1070_v31 = vunpack.i.h.bf16 %v1068_v29  ;;  %v1069_v32 = vunpack.i.l.bf16 %v1068_v29 }
 0x25e   : > { %1019 = vmatprep.mubr.bf16.mxu1 %v628_v30 }
 0x25f   : > { %v622_v33 = vsel %vm619_vm4, %v1069_v32, %v577_v7  ;;  %v623_v34 = vsel %vm619_vm4, %v1070_v31, %v579_v10 }
 0x260   : > { %v1073_v41 = vpop.permute.xlu1 %1072  ;;  %v629_v43 = vpack.c.bf16 %v623_v34, %v622_v33 }
 0x261   : > { %v1075_v45 = vunpack.i.h.bf16 %v1073_v41  ;;  %v1074_v46 = vunpack.i.l.bf16 %v1073_v41 }
 0x262   : > { %1020 = vmatmul.mubr.bf16.vlgmr.msra.gmra.mrb[0].mxu1 %v629_v43 }
 0x263   : > { %v624_v47 = vsel %vm619_vm4, %v1074_v46, %v581_v17  ;;  %v625_v48 = vsel %vm619_vm4, %v1075_v45, %v583_v20 }
 0x264   : > { %v1078_v49 = vpop.permute.xlu0 %1077  ;;  %v630_v50 = vpack.c.bf16 %v625_v48, %v624_v47  ;;  %v785_v13 = vpop.permute.xlu1 %784 }
 0x265   : > { %v1080_v51 = vunpack.i.h.bf16 %v1078_v49  ;;  %v1079_v52 = vunpack.i.l.bf16 %v1078_v49 }
 0x266   : > { %1023 = vmatprep.mubr.bf16.mxu1 %v630_v50 }
 0x267   : > { %v626_v54 = vsel %vm619_vm4, %v1079_v52, %v585_v23  ;;  %v627_v55 = vsel %vm619_vm4, %v1080_v51, %v594_v53 }
 0x268   : > { %v631_v56 = vpack.c.bf16 %v627_v55, %v626_v54  ;;  %v787_v15 = vpop.permute.xlu0 %786 }
 0x26a   : > { %1024 = vmatmul.mubr.bf16.gmra.mrb[4].mxu1 %v631_v56 }
 0x26c   : > { %v791_v16 = vpop.permute.xlu0 %790 }
 0x270   : > { %v795_v18 = vpop.permute.xlu0 %794 }
 0x335   : > { %v1021_v58 = vpop.f32.mrb[0].mxu1 }
 0x336   : > { %v746_v59 = vadd.f32 %v1021_v58, %v943_v57  ;;  %v737_v60 = vpop.f32.mrb[1].mxu1 }
 0x337   : > { %v1022_v61 = vpop.f32.mrb[2].mxu1  ;;  %v738_v63 = vadd.f32 %v943_v57, %v737_v60 }
 0x338   : > { %v770_v62 = vmul.f32 %v746_v59, %v1282_v37  ;;  %v749_v0 = vadd.f32 %v1022_v61, %v943_v57  ;;  %v740_v1 = vpop.f32.mrb[3].mxu1 }
 0x339   : > { %v741_v4 = vadd.f32 %v943_v57, %v740_v1  ;;  %v768_v3 = vmul.f32 %v738_v63, %v1280_v36 }
 0x33a   : > { %v771_v2 = vmul.f32 %v749_v0, %v1284_v38  ;;  %820 = vrot.lane.b32.xlu1 %v770_v62, %s1101_s15 }
 0x33b   : > { %v769_v6 = vmul.f32 %v741_v4, %v1278_v35 }
 0x33c   : > { %822 = vrot.lane.b32.xlu0 %v771_v2, %s1101_s15 }
 0x33d   : > { %v1025_v5 = vpop.f32.mrb[4].mxu1 }
 0x33e   : > { %v753_v7 = vpop.f32.mrb[5].mxu1  ;;  %816 = vrot.lane.b32.xlu1 %v768_v3, %s1101_s15  ;;  %v762_v11 = vadd.f32 %v1025_v5, %v943_v57 }
 0x33f   : > { %v754_v8 = vadd.f32 %v943_v57, %v753_v7  ;;  %v1026_v37 = vpop.f32.mrb[6].mxu1 }
 0x340   : > { %v756_v9 = vpop.f32.mrb[7].mxu1  ;;  %818 = vrot.lane.b32.xlu0 %v769_v6, %s1101_s15  ;;  %v765_v10 = vadd.f32 %v1026_v37, %v943_v57  ;;  %v774_v35 = vmul.f32 %v762_v11, %v1293_v42 }
 0x341   : > { %v772_v38 = vmul.f32 %v754_v8, %v1286_v39  ;;  %v757_v12 = vadd.f32 %v943_v57, %v756_v9  ;;  %v789_v39 = vpop.permute.xlu1 %788 }
 0x342   : > { %v775_v14 = vmul.f32 %v765_v10, %v1298_v44 }
 0x343   : > { %v773_v36 = vmul.f32 %v757_v12, %v1288_v40  ;;  %824 = vrot.lane.b32.xlu1 %v772_v38, %s1101_s15  ;;  %v799_v40 = vpop.permute.xlu0 %798 }
 0x345   : > { %826 = vrot.lane.b32.xlu0 %v773_v36, %s1101_s15  ;;  %v793_v17 = vpop.permute.xlu1 %792 }
 0x347   : > { %828 = vrot.lane.b32.xlu1 %v774_v35, %s1101_s15 }
 0x349   : > { %830 = vrot.lane.b32.xlu0 %v775_v14, %s1101_s15  ;;  %v797_v19 = vpop.permute.xlu1 %796 }
 0x3ac   : > { %v821_v42 = vpop.permute.xlu1 %820 }
 0x3ad   : > { %v842_v44 = vsel %vm619_vm4, %v789_v39, %v821_v42 }
 0x3ae   : > { %851 = vst.msk [vmem:[%s275_s16 + $0x10] sm:$0xff] %vm848_vm5, %v842_v44  ;;  %v823_v20 = vpop.permute.xlu0 %822 }
 0x3af   : > { %v843_v21 = vsel %vm619_vm4, %v791_v16, %v823_v20 }
 0x3b0   : > { %852 = vst.msk [vmem:[%s275_s16 + $0x18] sm:$0xff] %vm848_vm5, %v843_v21  ;;  %v817_v22 = vpop.permute.xlu1 %816 }
 0x3b1   : > { %v840_v23 = vsel %vm619_vm4, %v785_v13, %v817_v22 }
 0x3b2   : > { %849 = vst.msk [vmem:[%s275_s16] sm:$0xff] %vm848_vm5, %v840_v23  ;;  %v819_v24 = vpop.permute.xlu0 %818 }
 0x3b3   : > { %v841_v25 = vsel %vm619_vm4, %v787_v15, %v819_v24 }
 0x3b4   : > { %850 = vst.msk [vmem:[%s275_s16 + $0x8] sm:$0xff] %vm848_vm5, %v841_v25 }
 0x3b5   : > { %v825_v26 = vpop.permute.xlu1 %824 }
 0x3b6   : > { %v844_v27 = vsel %vm619_vm4, %v793_v17, %v825_v26 }
 0x3b7   : > { %853 = vst.msk [vmem:[%s275_s16 + $0x20] sm:$0xff] %vm848_vm5, %v844_v27  ;;  %v827_v28 = vpop.permute.xlu0 %826 }
 0x3b8   : > { %v845_v29 = vsel %vm619_vm4, %v795_v18, %v827_v28 }
 0x3b9   : > { %854 = vst.msk [vmem:[%s275_s16 + $0x28] sm:$0xff] %vm848_vm5, %v845_v29  ;;  %v829_v30 = vpop.permute.xlu1 %828 }
 0x3ba   : > { %v846_v31 = vsel %vm619_vm4, %v797_v19, %v829_v30 }
 0x3bb   : > { %855 = vst.msk [vmem:[%s275_s16 + $0x30] sm:$0xff] %vm848_vm5, %v846_v31  ;;  %v831_v32 = vpop.permute.xlu0 %830 }
 0x3bc   : > { %v847_v33 = vsel %vm619_vm4, %v799_v40, %v831_v32 }
 0x3bd   : > { %856 = vst.msk [vmem:[%s275_s16 + $0x38] sm:$0xff] %vm848_vm5, %v847_v33 }
 0x3be PF: > { %s16_s21 = sadd.s32 1, %s1097_s21  }
 0x3bf   : > { %p13_p4 = scmp.ge.s32.totalorder %s16_s21, 4  }
 0x3c1   :  { %15 = sbr.rel (!%p13_p4) target bundleno = 1 (0x1), region = 77 }

</bundles_post_ra>
